<compile_context>
chip_gen: v5e
topology: v5e:2x2
jax: 0.10.0
libtpu: 0.0.40
codegen_flags: <defaults>
</compile_context>

<pallas_src>
import numpy as np
import jax
import jax.numpy as jnp
from jax.experimental import pallas as pl
from jax.experimental.pallas import tpu as pltpu


# ------------------------------------------------------------------
# Deterministic parameter construction (mirrors get_pem_smp_weight).
# ------------------------------------------------------------------
def get_pem_smp_weight(temporal_dim, num_sample_point, num_prop_per_loc,
                       roi_expand_ratio):
    T = temporal_dim
    N = num_sample_point
    D = num_prop_per_loc
    w = np.zeros([T, N, D, T], dtype=np.float32)
    for i in range(T - 1):
        for j in range(min(T - 1 - i, D)):
            xmin = i
            xmax = j + 1
            length = xmax - xmin
            xmin_ext = xmin - length * roi_expand_ratio
            xmax_ext = xmax + length * roi_expand_ratio
            bin_size = (xmax_ext - xmin_ext) / (N - 1)
            points = [xmin_ext + ii * bin_size for ii in range(N)]
            for k, xp in enumerate(points):
                if xp < 0 or xp > T - 1:
                    continue
                left, right = int(np.floor(xp)), int(np.ceil(xp))
                left_weight = 1 - (xp - left)
                right_weight = 1 - (right - xp)
                w[left, k, j, i] += left_weight
                w[right, k, j, i] += right_weight
    return w.reshape(T, -1)  # (T, N*D*T), float32


# ------------------------------------------------------------------
# Pallas kernel: one MXU matmul per (row-tile, column-tile) output block.
# ------------------------------------------------------------------
def _bm_matmul_kernel(x_ref, w_ref, o_ref):
    # x_ref: (tm, T)   w_ref: (T, tn)   o_ref: (tm, tn)
    o_ref[...] = jnp.dot(x_ref[...], w_ref[...],
                         preferred_element_type=jnp.float32
                         ).astype(o_ref.dtype)


def _pick_tile(total, quantum, max_tile):
    """Largest tile <= max_tile that is a multiple of `quantum` and divides
    `total` exactly; falls back to the full extent (always a legal block)."""
    if total <= max_tile:
        return total
    t = (max_tile // quantum) * quantum
    while t >= quantum:
        if total % t == 0:
            return t
        t -= quantum
    return total


def bm_sampling_forward(X, smp_weight, batch_size, num_sample_point,
                        num_prop_per_loc, temporal_dim,
                        tm_max=512, tn_max=2048, compute_dtype=None):
    """X: (batch, channels, T) float32; smp_weight: (T, N*D*T) float32."""
    B, C, T = X.shape
    assert T == temporal_dim
    M = B * C
    NDT = smp_weight.shape[1]

    x_view = X.reshape(M, T)
    if compute_dtype is not None:
        # Optional bandwidth saver (e.g. jnp.bfloat16); accumulation stays f32.
        x_view = x_view.astype(compute_dtype)
        smp_weight = smp_weight.astype(compute_dtype)

    # Tile selection: lane-dense wide output columns, bounded row tiles.
    tm = _pick_tile(M, 8, tm_max)        # multiple of 8 (f32 sublane) or full M
    tn = _pick_tile(NDT, 128, tn_max)    # multiple of 128 (lane) or full NDT
    num_m = M // tm
    num_n = NDT // tn

    # Scoped-VMEM budget: double-buffered x/w/out tiles + headroom, clamped to
    # a v7x-safe ceiling (64 MiB physical per TensorCore).
    itemsize = jnp.dtype(x_view.dtype).itemsize
    tile_bytes = 2 * (itemsize * (tm * T + T * tn) + 4 * tm * tn)
    vmem_limit = int(min(max(2 * tile_bytes, 16 * 1024 * 1024),
                         56 * 1024 * 1024))

    cost = pl.CostEstimate(
        flops=2 * M * T * NDT,
        transcendentals=0,
        bytes_accessed=itemsize * (M * T + T * NDT) + 4 * M * NDT,
    )

    # Grid order: column tiles (j) outer, row tiles (i) inner, so each weight
    # tile is read from HBM once (the weight dominates the read bytes for
    # realistic BMN sizes) while the tiny X row blocks are re-streamed.
    out = pl.pallas_call(
        _bm_matmul_kernel,
        out_shape=jax.ShapeDtypeStruct((M, NDT), jnp.float32),
        grid=(num_n, num_m),
        in_specs=[
            pl.BlockSpec((tm, T), lambda j, i: (i, 0)),
            pl.BlockSpec((T, tn), lambda j, i: (0, j)),
        ],
        out_specs=pl.BlockSpec((tm, tn), lambda j, i: (i, j)),
        compiler_params=pltpu.CompilerParams(
            dimension_semantics=("parallel", "parallel"),
            vmem_limit_bytes=vmem_limit),
        cost_estimate=cost,
    )(x_view, smp_weight)

    return out.reshape(batch_size, C, num_sample_point, num_prop_per_loc,
                       temporal_dim)


if __name__ == "__main__":
    # Small, shape-consistent config (BMSampling only; the surrounding BMN
    # conv stacks are left to XLA).
    opt = {
        "temporal_scale": 16,
        "bmn_batch_size": 2,
        "num_sample_point": 8,
        "num_prop_per_loc": 4,
        "roi_expand_ratio": 0.5,
    }
    B = opt["bmn_batch_size"]
    C = 4
    T = opt["temporal_scale"]
    N = opt["num_sample_point"]
    D = opt["num_prop_per_loc"]

    smp_weight = jnp.asarray(
        get_pem_smp_weight(T, N, D, opt["roi_expand_ratio"]))

    key = jax.random.PRNGKey(0)
    X = jax.random.normal(key, (B, C, T), dtype=jnp.float32)

    result = bm_sampling_forward(X, smp_weight, B, N, D, T)
    result = jax.block_until_ready(result)

    # Reference check in plain JAX.
    ref = (X.reshape(-1, T) @ smp_weight).reshape(B, C, N, D, T)
    assert result.shape == (B, C, N, D, T)
    np.testing.assert_allclose(np.asarray(result), np.asarray(ref),
                               rtol=1e-5, atol=1e-5)
    print("KERNEL_OK")
</pallas_src>

<mosaic_0001>
module attributes {stable_mosaic.version = 11 : i64} {
  func.func @_bm_matmul_kernel(%arg0: i32, %arg1: i32, %arg2: memref<8x16xf32, #tpu.memory_space<vmem>>, %arg3: memref<16x512xf32, #tpu.memory_space<vmem>>, %arg4: memref<8x512xf32, #tpu.memory_space<vmem>>) attributes {dimension_semantics = [#tpu.dimension_semantics<parallel>, #tpu.dimension_semantics<parallel>], iteration_bounds = array<i64: 1, 1>, scalar_prefetch = 0 : i64, scratch_operands = 0 : i64, tpu.core_type = #tpu.core_type<tc>, window_params = [{transform_indices = @transform_0, window_bounds = array<i64: 8, 16>}, {transform_indices = @transform_1, window_bounds = array<i64: 16, 512>}, {transform_indices = @transform_2, window_bounds = array<i64: 8, 512>}]} {
    %c0 = arith.constant 0 : index
    %c0_0 = arith.constant 0 : index
    %0 = vector.load %arg2[%c0, %c0_0] : memref<8x16xf32, #tpu.memory_space<vmem>>, vector<8x16xf32>
    %c0_1 = arith.constant 0 : index
    %c0_2 = arith.constant 0 : index
    %1 = vector.load %arg3[%c0_1, %c0_2] : memref<16x512xf32, #tpu.memory_space<vmem>>, vector<16x512xf32>
    %cst = arith.constant dense<0.000000e+00> : vector<8x512xf32>
    %2 = tpu.matmul %0, %1, %cst {dimension_numbers = #tpu.dot_dimension_numbers<[1], [0], [0], [1], [0, 0, 1, 1], [], []>} : vector<8x16xf32>, vector<16x512xf32>, vector<8x512xf32> -> vector<8x512xf32>
    %c0_3 = arith.constant 0 : index
    %c0_4 = arith.constant 0 : index
    %3 = vector.load %arg4[%c0_3, %c0_4] : memref<8x512xf32, #tpu.memory_space<vmem>>, vector<8x512xf32>
    tpu.vector_store %arg4[%c0_3, %c0_4], %2 {strides = array<i32>} : memref<8x512xf32, #tpu.memory_space<vmem>>, vector<8x512xf32>,
    return
  }
  func.func @transform_0(%arg0: i32, %arg1: i32) -> (i32, i32) {
    %c0_i32 = arith.constant 0 : i32
    %c0_i32_0 = arith.constant 0 : i32
    return %arg1, %c0_i32 : i32, i32
  }
  func.func @transform_1(%arg0: i32, %arg1: i32) -> (i32, i32) {
    %c0_i32 = arith.constant 0 : i32
    %c0_i32_0 = arith.constant 0 : i32
    return %c0_i32, %arg0 : i32, i32
  }
  func.func @transform_2(%arg0: i32, %arg1: i32) -> (i32, i32) {
    %c0_i32 = arith.constant 0 : i32
    return %arg1, %arg0 : i32, i32
  }
}

</mosaic_0001>

<bundles_post_ra>
// kernel: tpu_custom_call.1
= control target key start
LH: loop header
LB: loop body
LE: loop exit
PB: predicated region body
PF: predicated region fallthrough
CT: control target
= control target key end

     0   :  { %7 = vsyncpa [#allocation3], 0  ;;  %s273_s0 = inlined_call_operand.hbm [shape: f32[8,16], index: 0, kind: input, shape index: {}]   ;;  %s274_s1 = inlined_call_operand.hbm [shape: f32[16,512], index: 1, kind: input, shape index: {}]   ;;  %s275_s2 = inlined_call_operand.hbm [shape: f32[8,512], index: 2, kind: output, shape index: {}]  }
   0x1   :  { %8 = vsyncpa [#allocation6], 0 }
   0x2   :  { %9 = vsyncpa [#allocation4], 0  ;;  %s15_s11 = sshll.u32 %s273_s0, 4  ;;  %s244_s12 = smov [#allocation2]   ;;  %s16_s11 = int_to_ptr.hbm [resolvable:$true] %s15_s11 }
   0x3   :  { %s17_s13 = sshll.u32 %s244_s12, 4  ;;  %s25_s16 = sshll.u32 %s274_s1, 4  ;;  %s18_s13 = int_to_ptr.vmem [resolvable:$true] %s17_s13  ;;  %s26_s16 = int_to_ptr.hbm [resolvable:$true] %s25_s16 }
   0x4   :  { %20 = dma.hbm_to_vmem [thread:$0]  %s16_s11, 128, %s18_s13, [#allocation3]  }
   0x5   :  { %s245_s17 = smov [#allocation5]   ;;  %s246_s19 = smov 512  }
   0x6   :  { %s27_s18 = sshll.u32 %s245_s17, 4  ;;  %s247_s20 = smov 32   ;;  %s28_s18 = int_to_ptr.vmem [resolvable:$true] %s27_s18 }
   0x7   :  { %33 = dma.hbm_to_vmem [thread:$0]  %s26_s16, 1024, %s28_s18, [#allocation6], %s246_s19, %s246_s19, %s247_s20  }
   0x8   :  { %238 = dma.done.wait [#allocation3], 128  }
   0x9   :  { %239 = vsyncadd [#allocation3], 4294967168 }
   0xa   :  { %240 = dma.done.wait [#allocation6], 1024  }
   0xb   :  { %241 = vsyncadd [#allocation6], 4294966272  ;;  %v49_v0 = vld [vmem:[#allocation5 + $0x30] sm:$0xff]  ;;  %v50_v1 = vld [vmem:[#allocation5 + $0x38] sm:$0xff]  ;;  %vm51_vm0 = vcmask 130048   ;;  %s248_s0 = smov [#allocation7]  }
   0xc   :  { %v45_v2 = vld [vmem:[#allocation5 + $0x10] sm:$0xff]  ;;  %109 = vmatpush.msra.mxu2 %v49_v0  ;;  %129 = vmatpush.msra.mxu3 %v50_v1  ;;  %v46_v3 = vld [vmem:[#allocation5 + $0x18] sm:$0xff]  ;;  %v47_v5 = vld [vmem:[#allocation5 + $0x20] sm:$0xff]  ;;  %s144_s1 = sshll.u32 %s248_s0, 4  ;;  %s146_s23 = sshll.u32 %s275_s2, 4  ;;  %s145_s1 = int_to_ptr.vmem [resolvable:$true] %s144_s1  ;;  %s147_s23 = int_to_ptr.hbm [resolvable:$true] %s146_s23 }
   0xd   :  { %v42_v4 = vld [vmem:[#allocation2] sm:$0xff]  ;;  %69 = vmatpush.msra.mxu0 %v47_v5  ;;  %v48_v6 = vld [vmem:[#allocation5 + $0x28] sm:$0xff]  ;;  %v43_v7 = vld [vmem:[#allocation5] sm:$0xff] }
   0xe   :  { %110 = vmatpush.msra.mxu2 %v45_v2  ;;  %130 = vmatpush.msra.mxu3 %v46_v3  ;;  %v44_v8 = vld [vmem:[#allocation5 + $0x8] sm:$0xff] }
   0xf   :  { %159 = vmatmul.msk.f32.vlgmr.msra.gmra.mxu2 %vm51_vm0, %v42_v4  ;;  %160 = vmatmul.msk.f32.vlgmr.msra.gmra.mxu3 %vm51_vm0, %v42_v4 }
  0x10   :  { %89 = vmatpush.msra.mxu1 %v48_v6  ;;  %70 = vmatpush.msra.mxu0 %v43_v7 }
  0x11   :  { %157 = vmatmul.msk.f32.vlgmr.msra.gmra.mxu0 %vm51_vm0, %v42_v4 }
  0x12   :  { %90 = vmatpush.msra.mxu1 %v44_v8 }
  0x13   :  { %158 = vmatmul.msk.f32.vlgmr.msra.gmra.mxu1 %vm51_vm0, %v42_v4 }
  0x8e   :  { %v72_v9 = vpop.f32.mrf.mxu0 }
  0x8f   :  { %135 = vst [vmem:[#allocation7] sm:$0xff] %v72_v9 }
  0x90   :  { %v92_v10 = vpop.f32.mrf.mxu1 }
  0x91   :  { %136 = vst [vmem:[#allocation7 + $0x8] sm:$0xff] %v92_v10 }
  0x92   :  { %v112_v11 = vpop.f32.mrf.mxu2  ;;  %v132_v12 = vpop.f32.mrf.mxu3 }
  0x93   :  { %137 = vst [vmem:[#allocation7 + $0x10] sm:$0xff] %v112_v11 }
  0x94   :  { %138 = vst [vmem:[#allocation7 + $0x18] sm:$0xff] %v132_v12 }
  0x95   :  { %149 = dma.vmem_to_hbm [thread:$0]  %s145_s1, 512, %s147_s23, [#allocation4]  }
  0x96   :  { %242 = dma.done.wait [#allocation4], 512  }
  0x97   :  { %243 = vsyncadd [#allocation4], 4294966784 }
  0x98   :  { %154 = vsyncpa [#allocation3], 1 }
  0x99   :  { %155 = vsyncpa [#allocation6], 1 }
  0x9a   :  { %156 = vsyncpa [#allocation4], 1 }

</bundles_post_ra>
